<compile_context>
chip_gen: v7x
topology: tpu7x:2x2x1
jax: 0.10.0
libtpu: 0.0.40
codegen_flags: <defaults>
</compile_context>

<pallas_src>
import jax
import jax.numpy as jnp
from jax.experimental import pallas as pl
from jax.experimental.pallas import tpu as pltpu


def _round_up(a, b):
    return ((a + b - 1) // b) * b


def residual_block_kernel(x_ref, w1_ref, w2_ref, sh_ref, o_ref):
    x = x_ref[...]                                       # [TILE_N, Dp] f32
    sh = sh_ref[...]                                     # [2, Dp] f32
    # fc1 (+bn1 scale folded into w1) -> +shift -> relu
    h = jnp.dot(x.astype(jnp.bfloat16), w1_ref[...],
                preferred_element_type=jnp.float32)      # [TILE_N, Dp] f32
    h = jnp.maximum(h + sh[0:1, :], 0.0)
    # fc2 (+bn2 scale folded into w2) -> +shift
    h2 = jnp.dot(h.astype(jnp.bfloat16), w2_ref[...],
                 preferred_element_type=jnp.float32)
    h2 = h2 + sh[1:2, :]
    # residual add -> relu   (dropout = identity in eval mode)
    o_ref[...] = jnp.maximum(h2 + x, 0.0)


def prepare_params(params, D, D_pad, eps=1e-5):
    """One-time param prep: fold BN into weights/shifts, pad to D_pad, cast
    weights to bf16.  Do NOT call this per forward pass."""
    def fold(w, b, gamma, beta, rmean, rvar):
        scale = gamma / jnp.sqrt(rvar + eps)             # [D]
        shift = (b - rmean) * scale + beta               # [D]
        # nn.Linear weight is [out, in]; transpose and fold scale into columns
        w_folded = w.T * scale[None, :]                  # [D_in, D_out]
        return w_folded, shift

    w1f, sh1 = fold(params["fc1_w"], params["fc1_b"], params["bn1_gamma"],
                    params["bn1_beta"], params["bn1_mean"], params["bn1_var"])
    w2f, sh2 = fold(params["fc2_w"], params["fc2_b"], params["bn2_gamma"],
                    params["bn2_beta"], params["bn2_mean"], params["bn2_var"])

    w1p = jnp.zeros((D_pad, D_pad), jnp.float32).at[:D, :D].set(w1f)
    w2p = jnp.zeros((D_pad, D_pad), jnp.float32).at[:D, :D].set(w2f)
    shifts = (jnp.zeros((2, D_pad), jnp.float32)
              .at[0, :D].set(sh1)
              .at[1, :D].set(sh2))
    return w1p.astype(jnp.bfloat16), w2p.astype(jnp.bfloat16), shifts


def residual_block(x, prepared, D):
    """x: [N, D] float32.  prepared: output of prepare_params (w1, w2, shifts
    padded to D_pad, weights in bf16)."""
    w1p, w2p, shifts = prepared
    N = x.shape[0]
    D_pad = w1p.shape[0]

    # Batch tiling: big tiles amortize per-step overhead; multiple of 8 (f32
    # sublanes).  Pad N so the grid divides evenly, slice back afterwards.
    TILE_N = min(512, _round_up(N, 8))
    N_pad = _round_up(N, TILE_N)

    x_p = jnp.zeros((N_pad, D_pad), jnp.float32).at[:N, :D].set(x)

    # VMEM budget (bytes): resident bf16 weights + double-buffered f32 x/out
    # tiles + shifts + f32 intermediate, with 2x headroom; clamp for v5e's
    # 16 MiB default and v7x's 64 MiB physical.
    est = (2 * 2 * D_pad * D_pad * 2          # weights (possibly 2 buffers)
           + 2 * 2 * TILE_N * D_pad * 4       # x and out, double-buffered
           + 2 * TILE_N * D_pad * 4           # intermediate h
           + 2 * 8 * D_pad * 4)               # shifts (tile-padded)
    vmem_limit = int(min(max(2 * est, 16 * 1024 * 1024), 48 * 1024 * 1024))

    grid = (N_pad // TILE_N,)
    flops = 2 * 2 * N_pad * D_pad * D_pad
    bytes_accessed = (N_pad * D_pad * 4 * 2           # x in, out
                      + 2 * D_pad * D_pad * 2         # bf16 weights
                      + 2 * D_pad * 4)                # shifts

    out = pl.pallas_call(
        residual_block_kernel,
        out_shape=jax.ShapeDtypeStruct((N_pad, D_pad), jnp.float32),
        grid=grid,
        in_specs=[
            pl.BlockSpec((TILE_N, D_pad), lambda i: (i, 0)),   # x tile
            pl.BlockSpec((D_pad, D_pad), lambda i: (0, 0)),    # w1 (resident)
            pl.BlockSpec((D_pad, D_pad), lambda i: (0, 0)),    # w2 (resident)
            pl.BlockSpec((2, D_pad), lambda i: (0, 0)),        # packed shifts
        ],
        out_specs=pl.BlockSpec((TILE_N, D_pad), lambda i: (i, 0)),
        compiler_params=pltpu.CompilerParams(
            dimension_semantics=("parallel",),
            vmem_limit_bytes=vmem_limit),
        cost_estimate=pl.CostEstimate(flops=flops, transcendentals=0,
                                      bytes_accessed=bytes_accessed),
    )(x_p, w1p, w2p, shifts)

    return out[:N, :D]


def reference(x, params, eps=1e-5):
    """Plain-JAX f32 reference of the eval-mode PyTorch forward."""
    def bn(h, g, b, m, v):
        return (h - m) / jnp.sqrt(v + eps) * g + b
    h = x @ params["fc1_w"].T + params["fc1_b"]
    h = jnp.maximum(bn(h, params["bn1_gamma"], params["bn1_beta"],
                       params["bn1_mean"], params["bn1_var"]), 0.0)
    h = h @ params["fc2_w"].T + params["fc2_b"]
    h = bn(h, params["bn2_gamma"], params["bn2_beta"],
           params["bn2_mean"], params["bn2_var"])
    return jnp.maximum(h + x, 0.0)


def make_params(key, D):
    ks = jax.random.split(key, 8)
    bound = 1.0 / jnp.sqrt(D)
    return {
        "fc1_w": jax.random.uniform(ks[0], (D, D), jnp.float32, -bound, bound),
        "fc1_b": jax.random.uniform(ks[1], (D,), jnp.float32, -bound, bound),
        "bn1_gamma": 1.0 + 0.1 * jax.random.normal(ks[2], (D,), jnp.float32),
        "bn1_beta": 0.1 * jax.random.normal(ks[3], (D,), jnp.float32),
        "bn1_mean": 0.05 * jax.random.normal(ks[4], (D,), jnp.float32),
        "bn1_var": jnp.abs(1.0 + 0.1 * jax.random.normal(ks[5], (D,), jnp.float32)),
        "fc2_w": jax.random.uniform(ks[6], (D, D), jnp.float32, -bound, bound),
        "fc2_b": jax.random.uniform(ks[7], (D,), jnp.float32, -bound, bound),
        "bn2_gamma": jnp.ones((D,), jnp.float32),
        "bn2_beta": jnp.zeros((D,), jnp.float32),
        "bn2_mean": jnp.zeros((D,), jnp.float32),
        "bn2_var": jnp.ones((D,), jnp.float32),
    }


if __name__ == "__main__":
    key = jax.random.PRNGKey(0)
    k_x, k_p = jax.random.split(key)
    N, D = 8, 32                      # batch=8, input_dim=32 (small synthetic)
    x = jax.random.normal(k_x, (N, D), jnp.float32)
    params = make_params(k_p, D)

    D_pad = _round_up(max(D, 128), 128)
    prepared = prepare_params(params, D, D_pad)       # one-time fold/pad/cast

    out = residual_block(x, prepared, D)
    out = jax.block_until_ready(out)

    ref = reference(x, params)
    assert out.shape == (N, D)
    # bf16 weights => looser tolerance vs the f32 reference.
    max_err = float(jnp.max(jnp.abs(out - ref)))
    assert max_err < 5e-2, f"mismatch vs reference (max abs err {max_err})"
    print("KERNEL_OK")
</pallas_src>

<mosaic_0001>
module attributes {stable_mosaic.version = 11 : i64} {
  func.func @residual_block_kernel(%arg0: i32, %arg1: memref<8x128xf32, #tpu.memory_space<vmem>>, %arg2: memref<128x128xbf16, #tpu.memory_space<vmem>>, %arg3: memref<128x128xbf16, #tpu.memory_space<vmem>>, %arg4: memref<2x128xf32, #tpu.memory_space<vmem>>, %arg5: memref<8x128xf32, #tpu.memory_space<vmem>>) attributes {dimension_semantics = [#tpu.dimension_semantics<parallel>], iteration_bounds = array<i64: 1>, scalar_prefetch = 0 : i64, scratch_operands = 0 : i64, tpu.core_type = #tpu.core_type<tc>, window_params = [{transform_indices = @transform_0, window_bounds = array<i64: 8, 128>}, {pipeline_mode = #tpu.pipeline_mode<synchronous>, transform_indices = @transform_1, window_bounds = array<i64: 128, 128>}, {pipeline_mode = #tpu.pipeline_mode<synchronous>, transform_indices = @transform_2, window_bounds = array<i64: 128, 128>}, {pipeline_mode = #tpu.pipeline_mode<synchronous>, transform_indices = @transform_3, window_bounds = array<i64: 2, 128>}, {transform_indices = @transform_4, window_bounds = array<i64: 8, 128>}]} {
    %c0 = arith.constant 0 : index
    %c0_0 = arith.constant 0 : index
    %0 = vector.load %arg1[%c0, %c0_0] : memref<8x128xf32, #tpu.memory_space<vmem>>, vector<8x128xf32>
    %c0_1 = arith.constant 0 : index
    %c0_2 = arith.constant 0 : index
    %1 = vector.load %arg4[%c0_1, %c0_2] : memref<2x128xf32, #tpu.memory_space<vmem>>, vector<2x128xf32>
    %2 = arith.truncf %0 : vector<8x128xf32> to vector<8x128xbf16>
    %c0_3 = arith.constant 0 : index
    %c0_4 = arith.constant 0 : index
    %3 = vector.load %arg2[%c0_3, %c0_4] : memref<128x128xbf16, #tpu.memory_space<vmem>>, vector<128x128xbf16>
    %cst = arith.constant dense<0.000000e+00> : vector<8x128xf32>
    %4 = tpu.matmul %2, %3, %cst {dimension_numbers = #tpu.dot_dimension_numbers<[1], [0], [0], [1], [0, 0, 1, 1], [], []>} : vector<8x128xbf16>, vector<128x128xbf16>, vector<8x128xf32> -> vector<8x128xf32>
    %5 = vector.extract_strided_slice %1 {offsets = [0, 0], sizes = [1, 128], strides = [1, 1]} : vector<2x128xf32> to vector<1x128xf32>
    %6 = vector.broadcast %5 : vector<1x128xf32> to vector<8x128xf32>
    %7 = arith.addf %4, %6 : vector<8x128xf32>
    %cst_5 = arith.constant 0.000000e+00 : f32
    %8 = vector.broadcast %cst_5 : f32 to vector<8x128xf32>
    %9 = arith.maximumf %7, %8 : vector<8x128xf32>
    %10 = arith.truncf %9 : vector<8x128xf32> to vector<8x128xbf16>
    %c0_6 = arith.constant 0 : index
    %c0_7 = arith.constant 0 : index
    %11 = vector.load %arg3[%c0_6, %c0_7] : memref<128x128xbf16, #tpu.memory_space<vmem>>, vector<128x128xbf16>
    %cst_8 = arith.constant dense<0.000000e+00> : vector<8x128xf32>
    %12 = tpu.matmul %10, %11, %cst_8 {dimension_numbers = #tpu.dot_dimension_numbers<[1], [0], [0], [1], [0, 0, 1, 1], [], []>} : vector<8x128xbf16>, vector<128x128xbf16>, vector<8x128xf32> -> vector<8x128xf32>
    %13 = vector.extract_strided_slice %1 {offsets = [1, 0], sizes = [1, 128], strides = [1, 1]} : vector<2x128xf32> to vector<1x128xf32>
    %14 = vector.broadcast %13 : vector<1x128xf32> to vector<8x128xf32>
    %15 = arith.addf %12, %14 : vector<8x128xf32>
    %16 = arith.addf %15, %0 : vector<8x128xf32>
    %cst_9 = arith.constant 0.000000e+00 : f32
    %17 = vector.broadcast %cst_9 : f32 to vector<8x128xf32>
    %18 = arith.maximumf %16, %17 : vector<8x128xf32>
    %c0_10 = arith.constant 0 : index
    %c0_11 = arith.constant 0 : index
    %19 = vector.load %arg5[%c0_10, %c0_11] : memref<8x128xf32, #tpu.memory_space<vmem>>, vector<8x128xf32>
    tpu.vector_store %arg5[%c0_10, %c0_11], %18 {strides = array<i32>} : memref<8x128xf32, #tpu.memory_space<vmem>>, vector<8x128xf32>,
    return
  }
  func.func @transform_0(%arg0: i32) -> (i32, i32) {
    %c0_i32 = arith.constant 0 : i32
    %c0_i32_0 = arith.constant 0 : i32
    return %arg0, %c0_i32 : i32, i32
  }
  func.func @transform_1(%arg0: i32) -> (i32, i32) {
    %c0_i32 = arith.constant 0 : i32
    %c0_i32_0 = arith.constant 0 : i32
    %c0_i32_1 = arith.constant 0 : i32
    return %c0_i32, %c0_i32_0 : i32, i32
  }
  func.func @transform_2(%arg0: i32) -> (i32, i32) {
    %c0_i32 = arith.constant 0 : i32
    %c0_i32_0 = arith.constant 0 : i32
    %c0_i32_1 = arith.constant 0 : i32
    return %c0_i32, %c0_i32_0 : i32, i32
  }
  func.func @transform_3(%arg0: i32) -> (i32, i32) {
    %c0_i32 = arith.constant 0 : i32
    %c0_i32_0 = arith.constant 0 : i32
    %c0_i32_1 = arith.constant 0 : i32
    return %c0_i32, %c0_i32_0 : i32, i32
  }
  func.func @transform_4(%arg0: i32) -> (i32, i32) {
    %c0_i32 = arith.constant 0 : i32
    %c0_i32_0 = arith.constant 0 : i32
    return %arg0, %c0_i32 : i32, i32
  }
}

</mosaic_0001>

<bundles_post_ra>
// kernel: tpu_custom_call.1
= control target key start
LH: loop header
LB: loop body
LE: loop exit
PB: predicated region body
PF: predicated region fallthrough
CT: control target
= control target key end

     0   :  { %9 = vsyncpa [#allocation3], 0  ;;  %s580_s0 = inlined_call_operand.hbm [shape: f32[8,128], index: 0, kind: input, shape index: {}]   ;;  %s581_s1 = inlined_call_operand.hbm [shape: bf16[128,128], index: 1, kind: input, shape index: {}]   ;;  %s582_s2 = inlined_call_operand.hbm [shape: bf16[128,128], index: 2, kind: input, shape index: {}]   ;;  %s583_s3 = inlined_call_operand.vmem [shape: f32[2,128], index: 3, kind: input, shape index: {}]   ;;  %s584_s4 = inlined_call_operand.hbm [shape: f32[8,128], index: 4, kind: output, shape index: {}]  }
   0x1   :  { %10 = vsyncpa [#allocation6], 0 }
   0x2   :  { %11 = vsyncpa [#allocation4], 0  ;;  %s490_s15 = smov [#allocation5]   ;;  %s396_s19 = scalar_lea.hbm %s581_s1, 1024 }
   0x3   :  { %s27_s16 = sshll.u32 %s490_s15, 4  ;;  %p397_p0 = scmp.ne.s32.totalorder %s581_s1, %s396_s19  ;;  %s28_s16 = int_to_ptr.vmem [resolvable:$true] %s27_s16 }
   0x4   :  { %p400_p1 = scmp.lt.u32.totalorder %s396_s19, %s581_s1 }
   0x6   :  { %p402_p2 = pnand %p400_p1, %p397_p0 }
   0x8   :  { %405 = shalt.err (!%p402_p2)
}
   0x9   :  { %s406_s24 = scalar_lea.vmem %s28_s16, 1024  ;;  %p411_p4 = scmp.lt.s32.totalorder %s28_s16, %s28_s16 }
   0xa   :  { %p407_p3 = scmp.ne.s32.totalorder %s28_s16, %s406_s24  ;;  %p412_p5 = scmp.lt.s32.totalorder %s406_s24, %s406_s24 }
   0xc   :  { %p413_p6 = por %p412_p5, %p411_p4 }
   0xe   :  { %p414_p7 = pnand %p413_p6, %p407_p3 }
  0x10   :  { %417 = shalt.err (!%p414_p7)
}
  0x11   :  { %s491_s25 = smov 64   ;;  %s492_s26 = smov 4  }
  0x12   :  { %33 = dma.hbm_to_vmem [thread:$0]  %s581_s1, 1024, %s28_s16, [#allocation6], %s491_s25, %s491_s25, %s492_s26  }
  0x13   :  { %s493_s29 = smov [#allocation2]   ;;  %s494_s5 = smov [#allocation7]  }
  0x14   :  { %s18_s30 = sshll.u32 %s493_s29, 4  ;;  %s39_s6 = sshll.u32 %s494_s5, 4  ;;  %s19_s30 = int_to_ptr.vmem [resolvable:$true] %s18_s30  ;;  %s40_s6 = int_to_ptr.vmem [resolvable:$true] %s39_s6 }
  0x15   :  { %s418_s9 = scalar_lea.hbm %s580_s0, 128 }
  0x16   :  { %p419_p8 = scmp.ne.s32.totalorder %s580_s0, %s418_s9  ;;  %p422_p9 = scmp.lt.u32.totalorder %s418_s9, %s580_s0 }
  0x18   :  { %p424_p10 = pnand %p422_p9, %p419_p8 }
  0x1a   :  { %427 = shalt.err (!%p424_p10)
}
  0x1b   :  { %s428_s1 = scalar_lea.vmem %s19_s30, 128  ;;  %p433_p12 = scmp.lt.s32.totalorder %s19_s30, %s19_s30 }
  0x1c   :  { %p429_p11 = scmp.ne.s32.totalorder %s19_s30, %s428_s1  ;;  %p434_p13 = scmp.lt.s32.totalorder %s428_s1, %s428_s1 }
  0x1e   :  { %p435_p0 = por %p434_p13, %p433_p12 }
  0x20   :  { %p436_p1 = pnand %p435_p0, %p429_p11 }
  0x22   :  { %439 = shalt.err (!%p436_p1)
}
  0x23   :  { %21 = dma.hbm_to_vmem [thread:$0]  %s580_s0, 128, %s19_s30, [#allocation3]  }
  0x24   :  { %s440_s18 = scalar_lea.hbm %s582_s2, 1024 }
  0x25   :  { %p441_p2 = scmp.ne.s32.totalorder %s582_s2, %s440_s18  ;;  %p444_p3 = scmp.lt.u32.totalorder %s440_s18, %s582_s2 }
  0x27   :  { %p446_p4 = pnand %p444_p3, %p441_p2 }
  0x29   :  { %449 = shalt.err (!%p446_p4)
}
  0x2a   :  { %s450_s23 = scalar_lea.vmem %s40_s6, 1024  ;;  %p455_p6 = scmp.lt.s32.totalorder %s40_s6, %s40_s6 }
  0x2b   :  { %p451_p5 = scmp.ne.s32.totalorder %s40_s6, %s450_s23  ;;  %p456_p7 = scmp.lt.s32.totalorder %s450_s23, %s450_s23 }
  0x2d   :  { %p457_p8 = por %p456_p7, %p455_p6 }
  0x2f   :  { %p458_p9 = pnand %p457_p8, %p451_p5 }
  0x31   :  { %461 = shalt.err (!%p458_p9)
}
  0x32   :  { %45 = dma.hbm_to_vmem [thread:$0]  %s582_s2, 1024, %s40_s6, [#allocation6], %s491_s25, %s491_s25, %s492_s26  }
  0x33   :  { %484 = dma.done.wait [#allocation3], 128  }
  0x34   :  { %485 = vsyncadd [#allocation3], 4294967168 }
  0x35   :  { %486 = dma.done.wait [#allocation6], 2048  }
  0x36   :  { %487 = vsyncadd [#allocation6], 4294965248  ;;  %v495_v0 = vmov 0.0   ;;  %vm496_vm0 = vmmov 0   ;;  %v380_v1 = vld [vmem:[#allocation5] sm:$0xff]   ;;  %v381_v2 = vld [vmem:[#allocation5 + $0x8] sm:$0xff]   ;;  %v77_v19 = vlaneseq }
  0x37   :  { %332 = vmatprep.subr.bf16.mxu0 %v495_v0  ;;  %348 = vmatprep.mubr.msk.bf16.mxu0 %vm496_vm0, %v495_v0  ;;  %v382_v3 = vld [vmem:[#allocation5 + $0x10] sm:$0xff]   ;;  %v388_v4 = vld [vmem:[#allocation7] sm:$0xff]   ;;  %v383_v5 = vld [vmem:[#allocation5 + $0x18] sm:$0xff]   ;;  %s497_s26 = smov [#allocation8]  }
  0x38   :  { %352 = vmatprep.subr.bf16.mxu1 %v495_v0  ;;  %368 = vmatprep.mubr.msk.bf16.mxu1 %vm496_vm0, %v495_v0  ;;  %v389_v6 = vld [vmem:[#allocation7 + $0x8] sm:$0xff]   ;;  %v384_v7 = vld [vmem:[#allocation5 + $0x20] sm:$0xff]   ;;  %v390_v8 = vld [vmem:[#allocation7 + $0x10] sm:$0xff]   ;;  %v78_v20 = vshrl.u32 %v77_v19, 7  ;;  %s288_s27 = sshll.u32 %s497_s26, 4  ;;  %s289_s27 = int_to_ptr.vmem [resolvable:$true] %s288_s27 }
  0x39   :  { %333 = vmatpush3.bf16.msra.mxu0 %v380_v1  ;;  %353 = vmatpush3.bf16.msra.mxu1 %v388_v4  ;;  %v385_v9 = vld [vmem:[#allocation5 + $0x28] sm:$0xff]   ;;  %v391_v10 = vld [vmem:[#allocation7 + $0x18] sm:$0xff]   ;;  %v386_v11 = vld [vmem:[#allocation5 + $0x30] sm:$0xff]   ;;  %p467_p11 = scmp.lt.s32.totalorder %s289_s27, %s289_s27 }
  0x3a   :  { %334 = vmatprep.subr.bf16.mxu0 %v495_v0  ;;  %354 = vmatprep.subr.bf16.mxu1 %v495_v0  ;;  %v392_v12 = vld [vmem:[#allocation7 + $0x20] sm:$0xff]   ;;  %v387_v13 = vld [vmem:[#allocation5 + $0x38] sm:$0xff]   ;;  %v393_v15 = vld [vmem:[#allocation7 + $0x28] sm:$0xff]   ;;  %v79_v21 = vsub.s32 0, %v78_v20  ;;  %v189_v31 = vsub.s32 1, %v78_v20 }
  0x3b   :  { %v58_v14 = vld [vmem:[#allocation2] sm:$0xff]  ;;  %v394_v17 = vld [vmem:[#allocation7 + $0x30] sm:$0xff]  }
  0x3c   :  { %v60_v16 = vpack.c.bf16 %v58_v14, %v58_v14  ;;  %v395_v18 = vld [vmem:[#allocation7 + $0x38] sm:$0xff]  }
  0x3d   :  { %335 = vmatpush3.bf16.msra.mxu0 %v381_v2  ;;  %355 = vmatpush3.bf16.msra.mxu1 %v389_v6  ;;  %v59_v22 = vld [vmem:[%s583_s3] sm:$0x3]  ;;  %s462_s3 = scalar_lea.vmem %s289_s27, 128 }
  0x3e   :  { %336 = vmatprep.subr.bf16.mxu0 %v495_v0  ;;  %356 = vmatprep.subr.bf16.mxu1 %v495_v0  ;;  %v80_v23 = vrot.slane %v59_v22, %v79_v21  ;;  %v190_v32 = vrot.slane %v59_v22, %v189_v31  ;;  %p463_p10 = scmp.ne.s32.totalorder %s289_s27, %s462_s3  ;;  %p468_p12 = scmp.lt.s32.totalorder %s462_s3, %s462_s3 }
  0x40   :  { %p469_p13 = por %p468_p12, %p467_p11 }
  0x41   :  { %337 = vmatpush3.bf16.msra.mxu0 %v382_v3  ;;  %357 = vmatpush3.bf16.msra.mxu1 %v390_v8 }
  0x42   :  { %338 = vmatprep.subr.bf16.mxu0 %v495_v0  ;;  %358 = vmatprep.subr.bf16.mxu1 %v495_v0  ;;  %p470_p0 = pnand %p469_p13, %p463_p10 }
  0x45   :  { %339 = vmatpush3.bf16.msra.mxu0 %v383_v5  ;;  %359 = vmatpush3.bf16.msra.mxu1 %v391_v10 }
  0x46   :  { %340 = vmatprep.subr.bf16.mxu0 %v495_v0  ;;  %360 = vmatprep.subr.bf16.mxu1 %v495_v0 }
  0x49   :  { %341 = vmatpush3.bf16.msra.mxu0 %v384_v7  ;;  %361 = vmatpush3.bf16.msra.mxu1 %v392_v12 }
  0x4a   :  { %342 = vmatprep.subr.bf16.mxu0 %v495_v0  ;;  %362 = vmatprep.subr.bf16.mxu1 %v495_v0 }
  0x4d   :  { %343 = vmatpush3.bf16.msra.mxu0 %v385_v9  ;;  %363 = vmatpush3.bf16.msra.mxu1 %v393_v15 }
  0x4e   :  { %344 = vmatprep.subr.bf16.mxu0 %v495_v0  ;;  %364 = vmatprep.subr.bf16.mxu1 %v495_v0 }
  0x51   :  { %345 = vmatpush3.bf16.msra.mxu0 %v386_v11  ;;  %365 = vmatpush3.bf16.msra.mxu1 %v394_v17 }
  0x52   :  { %346 = vmatprep.subr.bf16.mxu0 %v495_v0  ;;  %366 = vmatprep.subr.bf16.mxu1 %v495_v0 }
  0x55   :  { %347 = vmatpush3.bf16.msra.mxu0 %v387_v13  ;;  %367 = vmatpush3.bf16.msra.mxu1 %v395_v18 }
  0x58   :  { %349 = vmatmul.mubr.bf16.vlgmr.msra.gmra.mrb[0].mxu0 %v60_v16 }
 0x12b   :  { %v163_v24 = vpop.f32.mrb[0].mxu0 }
 0x12c   :  { %v164_v25 = vadd.f32 %v163_v24, %v80_v23  ;;  %v350_v26 = vpop.f32.mrb[1].mxu0 }
 0x12d   :  { %v166_v27 = vpop.f32.mrb[2].mxu0 }
 0x12e   :  { %v169_v28 = vmax.f32 %v164_v25, 0.0  ;;  %v351_v29 = vpop.f32.mrb[3].mxu0 }
 0x130   :  { %v170_v30 = vpack.c.bf16 %v169_v28, %v169_v28 }
 0x132   :  { %369 = vmatmul.mubr.bf16.vlgmr.msra.gmra.mrb[0].mxu1 %v170_v30 }
 0x205   :  { %v273_v33 = vpop.f32.mrb[0].mxu1 }
 0x206   :  { %v274_v34 = vadd.f32 %v273_v33, %v190_v32  ;;  %v370_v35 = vpop.f32.mrb[1].mxu1 }
 0x207   :  { %v276_v36 = vpop.f32.mrb[2].mxu1 }
 0x208   :  { %v279_v37 = vadd.f32 %v274_v34, %v58_v14  ;;  %v371_v38 = vpop.f32.mrb[3].mxu1 }
 0x20a   :  { %v280_v39 = vmax.f32 %v279_v37, 0.0 }
 0x20c   :  { %281 = vst [vmem:[#allocation8] sm:$0xff] %v280_v39 }
 0x20d   :  { %473 = shalt.err (!%p470_p0)
}
 0x20e   :  { %s474_s30 = scalar_lea.hbm %s584_s4, 128 }
 0x20f   :  { %p475_p1 = scmp.ne.s32.totalorder %s584_s4, %s474_s30  ;;  %p478_p2 = scmp.lt.u32.totalorder %s474_s30, %s584_s4 }
 0x211   :  { %p480_p3 = pnand %p478_p2, %p475_p1 }
 0x213   :  { %483 = shalt.err (!%p480_p3)
}
 0x214   :  { %291 = dma.vmem_to_hbm [thread:$0]  %s289_s27, 128, %s584_s4, [#allocation4]  }
 0x215   :  { %488 = dma.done.wait [#allocation4], 128  }
 0x216   :  { %489 = vsyncadd [#allocation4], 4294967168 }
 0x217   :  { %295 = vsyncpa [#allocation3], 1 }
 0x218   :  { %296 = vsyncpa [#allocation6], 1 }
 0x219   :  { %297 = vsyncpa [#allocation4], 1 }

</bundles_post_ra>
